<compile_context>
chip_gen: v6e
topology: v6e:2x2x1
jax: 0.10.0
libtpu: 0.0.40
codegen_flags: <defaults>
</compile_context>

<pallas_src>
from functools import partial

import jax
import jax.numpy as jnp
from jax.experimental import pallas as pl
from jax.experimental.pallas import tpu as pltpu

LANES = 128


# ---------------------------------------------------------------------------
# Kernel bodies (pure elementwise on (block_rows, 128) VMEM tiles)
# ---------------------------------------------------------------------------
def _helu_fwd_kernel(z_ref, o_ref):
    # forward == ReLU: single VPU max, no compare+select, no zeros tensor.
    o_ref[...] = jnp.maximum(z_ref[...], 0).astype(o_ref.dtype)


def _make_helu_bwd_kernel(alpha):
    alpha = float(alpha)

    def kernel(z_ref, g_ref, o_ref):
        z = z_ref[...]
        g = g_ref[...]
        o_ref[...] = jnp.where(z > -alpha, g, jnp.zeros_like(g)).astype(o_ref.dtype)

    return kernel


# ---------------------------------------------------------------------------
# Tiling helpers
# ---------------------------------------------------------------------------
def _block_rows_for(rows, dtype):
    """Pick a sublane-aligned block row count targeting ~2 MiB tiles."""
    itemsize = jnp.dtype(dtype).itemsize
    sub = max(8, 32 // itemsize)  # sublane packing: f32 -> 8, bf16 -> 16, int8 -> 32

    def rup(v, m):
        return pl.cdiv(v, m) * m

    # ~2 MiB per tile: >=85% of HBM roofline in mem-bound sweeps, and
    # 2*(inputs)+2*(output) double-buffers stay well inside scoped VMEM
    # on v5e (16 MiB default), v6e and v7x (64 MiB physical).
    target = max(sub, ((2 * 1024 * 1024) // (LANES * itemsize) // sub) * sub)
    if rows >= 2 * sub:
        # ensure at least 2 grid steps so both TensorCores on v7x get work
        block = min(target, rup(pl.cdiv(rows, 2), sub))
    else:
        block = min(target, rup(rows, sub))
    return max(sub, block)


def _elementwise_call(kernel, out_dtype, *arrays):
    """Run an elementwise Pallas kernel over same-shaped arrays (1 output)."""
    shape = arrays[0].shape
    n = arrays[0].size
    rows = pl.cdiv(n, LANES)
    pad = rows * LANES - n

    flats = []
    for a in arrays:
        f = jnp.ravel(a)
        if pad:  # only when the element count is not a multiple of 128 lanes
            f = jnp.pad(f, (0, pad))
        flats.append(f.reshape(rows, LANES))

    block_rows = _block_rows_for(rows, out_dtype)
    grid = (pl.cdiv(rows, block_rows),)
    spec = pl.BlockSpec((block_rows, LANES), lambda i: (i, 0))

    out2d = pl.pallas_call(
        kernel,
        out_shape=jax.ShapeDtypeStruct((rows, LANES), out_dtype),
        grid=grid,
        in_specs=[spec] * len(flats),
        out_specs=spec,
        compiler_params=pltpu.CompilerParams(
            dimension_semantics=("parallel",),
        ),
    )(*flats)

    out = out2d.reshape(-1)
    if pad:
        out = out[:n]
    return out.reshape(shape)


# ---------------------------------------------------------------------------
# HeLU with custom VJP (alpha-dependent backward, per the autograd.Function)
# ---------------------------------------------------------------------------
@partial(jax.custom_vjp, nondiff_argnums=(1,))
def _helu(z, alpha):
    return _elementwise_call(_helu_fwd_kernel, z.dtype, z)


def _helu_fwd_rule(z, alpha):
    return _elementwise_call(_helu_fwd_kernel, z.dtype, z), z


def _helu_bwd_rule(alpha, z, g):
    return (_elementwise_call(_make_helu_bwd_kernel(alpha), g.dtype, z, g),)


_helu.defvjp(_helu_fwd_rule, _helu_bwd_rule)


@partial(jax.jit, static_argnames=("alpha",))
def helu(x: jax.Array, alpha: float = 0.05) -> jax.Array:
    """HeLU: forward == ReLU; backward gate is (x > -alpha)."""
    return _helu(x, float(alpha))


# ---------------------------------------------------------------------------
if __name__ == "__main__":
    key = jax.random.PRNGKey(0)
    # NCHW-shaped example activations, matching the module's typical use.
    x = jax.random.normal(key, (2, 4, 16, 16), dtype=jnp.float32)

    y = helu(x, alpha=0.05)
    y = jax.block_until_ready(y)

    # Forward correctness vs pure-JAX reference.
    y_ref = jnp.where(x > 0, x, jnp.zeros_like(x))
    assert y.shape == x.shape and y.dtype == x.dtype
    assert jnp.allclose(y, y_ref), "HeLU forward mismatch vs reference"

    # Backward correctness (HeLU gradient, gated at -alpha).
    g = jax.grad(lambda v: jnp.sum(helu(v, alpha=0.05)))(x)
    g = jax.block_until_ready(g)
    g_ref = jnp.where(x > -0.05, 1.0, 0.0).astype(x.dtype)
    assert jnp.allclose(g, g_ref), "HeLU backward mismatch vs reference"

    print("KERNEL_OK")
</pallas_src>

<mosaic_0001>
module attributes {stable_mosaic.version = 11 : i64} {
  func.func @_helu_fwd_kernel(%arg0: i32, %arg1: memref<8x128xf32, #tpu.memory_space<vmem>>, %arg2: memref<8x128xf32, #tpu.memory_space<vmem>>) attributes {dimension_semantics = [#tpu.dimension_semantics<parallel>], iteration_bounds = array<i64: 2>, scalar_prefetch = 0 : i64, scratch_operands = 0 : i64, tpu.core_type = #tpu.core_type<tc>, window_params = [{transform_indices = @transform_0, window_bounds = array<i64: 8, 128>}, {transform_indices = @transform_1, window_bounds = array<i64: 8, 128>}]} {
    %c0 = arith.constant 0 : index
    %c0_0 = arith.constant 0 : index
    %0 = vector.load %arg1[%c0, %c0_0] : memref<8x128xf32, #tpu.memory_space<vmem>>, vector<8x128xf32>
    %cst = arith.constant 0.000000e+00 : f32
    %1 = vector.broadcast %cst : f32 to vector<8x128xf32>
    %2 = arith.maximumf %0, %1 : vector<8x128xf32>
    %c0_1 = arith.constant 0 : index
    %c0_2 = arith.constant 0 : index
    %3 = vector.load %arg2[%c0_1, %c0_2] : memref<8x128xf32, #tpu.memory_space<vmem>>, vector<8x128xf32>
    tpu.vector_store %arg2[%c0_1, %c0_2], %2 {strides = array<i32>} : memref<8x128xf32, #tpu.memory_space<vmem>>, vector<8x128xf32>,
    return
  }
  func.func @transform_0(%arg0: i32) -> (i32, i32) {
    %c0_i32 = arith.constant 0 : i32
    %c0_i32_0 = arith.constant 0 : i32
    return %arg0, %c0_i32 : i32, i32
  }
  func.func @transform_1(%arg0: i32) -> (i32, i32) {
    %c0_i32 = arith.constant 0 : i32
    %c0_i32_0 = arith.constant 0 : i32
    return %arg0, %c0_i32 : i32, i32
  }
}

</mosaic_0001>

<bundles_post_ra>
// kernel: helu.1
= control target key start
LH: loop header
LB: loop body
LE: loop exit
PB: predicated region body
PF: predicated region fallthrough
CT: control target
= control target key end

     0   :  { %s189_s6 = smov 0   ;;  %s209_s0 = inlined_call_operand.vmem [shape: f32[16,128], index: 0, kind: input, shape index: {}]   ;;  %s210_s1 = inlined_call_operand.vmem [shape: f32[16,128], index: 1, kind: output, shape index: {}]  }
   0x1 LB: > { %s168_s7 = sadd.s32 4294967295, %s191_s6   ;;  %p172_p0 = scmp.ge.s32.totalorder %s191_s6, 1  ;;  %s191_s6 = sphi %s189_s6, %s11_s6  }
   0x2   : > { %p86_p1 = scmp.lt.s32.totalorder %s191_s6, 3 }
   0x4   : > { %p87_p2 = pnand %p172_p0, %p86_p1 }
   0x5   : > { %p104_p3 = scmp.lt.s32.totalorder (!%p87_p2), %s168_s7, 1 }
   0x6   : > { %90 = sbr.rel (%p87_p2) target bundleno = 18 (0x12), region = 24 }
   0xb   : > { %s212_s7 = smov (!%p104_p3, %s168_s7), 1 }
   0xc   : > { %s173_s8 = sshll.u32 %s212_s7, 3 }
   0xd   : > { %s107_s11 = scalar_lea.vmem %s209_s0, %s173_s8  ;;  %s111_s14 = scalar_lea.vmem %s210_s1, %s173_s8 }
   0xe   : > { %v112_v0 = vld [vmem:[%s107_s11] sm:$0xff] }
   0xf   : > { %v113_v1 = vmax.f32 %v112_v0, 0.0 }
  0x11   : > { %114 = vst [vmem:[%s111_s14] sm:$0xff] %v113_v1 }
  0x12 PF: > { %s11_s6 = sadd.s32 1, %s191_s6  }
  0x13   : > { %p8_p4 = scmp.ge.s32.totalorder %s11_s6, 4  }
  0x15   :  { %10 = sbr.rel (!%p8_p4) target bundleno = 1 (0x1), region = 54 }

</bundles_post_ra>
